<compile_context>
chip_gen: v5e
topology: v5e:2x2
jax: 0.10.0
libtpu: 0.0.40
codegen_flags: <defaults>
</compile_context>

<pallas_src>
import jax
import jax.numpy as jnp
from jax import lax
from jax.experimental import pallas as pl
from jax.experimental.pallas import tpu as pltpu


def mlp_kernel(x_ref, w1t_ref, b1_ref, w2s_ref, b2s_ref, w3c_ref, b3_ref, o_ref):
    # batch-on-lanes layout:
    #   x_ref   : (2, TB)      input tile (features on sublanes, batch on lanes)
    #   w1t_ref : (W, 2)       first-layer weight, transposed
    #   b1_ref  : (W, 1)
    #   w2s_ref : (L, W, W)    stacked inner-layer weights, transposed
    #   b2s_ref : (L, W, 1)
    #   w3c_ref : (W, 1)       last-layer weight column
    #   b3_ref  : (1, 1) SMEM  last-layer bias scalar
    #   o_ref   : (1, TB)      output tile (lane dense)
    x = x_ref[...]
    w1t = w1t_ref[...]

    # first layer (K=2): broadcast FMA on the VPU, skip the MXU entirely.
    h = w1t[:, 0:1] * x[0:1, :] + w1t[:, 1:2] * x[1:2, :] + b1_ref[...]

    # inner layers: (W, W) @ (W, TB) on the MXU, tanh on the EUP.
    num_inner = w2s_ref.shape[0]

    def inner(l, h):
        z = jnp.dot(w2s_ref[l], h, preferred_element_type=jnp.float32) + b2s_ref[l]
        return jnp.tanh(z)

    # cap the unroll so large num_inner does not blow up code size / vreg live ranges
    h = lax.fori_loop(0, num_inner, inner, h, unroll=max(1, min(num_inner, 4)))

    # last layer (N=1): elementwise mul + sublane reduce (VPU + XLU), skip MXU.
    y = jnp.sum(w3c_ref[...] * h, axis=0, keepdims=True) + b3_ref[0, 0]
    o_ref[...] = y.astype(o_ref.dtype)


def _default_tile_batch():
    """Generation-aware default lane (batch) tile size."""
    try:
        kind = jax.devices()[0].device_kind.lower()
    except Exception:
        return 2048
    # v5e has a single vector-store slot per bundle: keep the (Wpad, TB) working
    # set modest so register spills do not saturate vst. v6e/v7x tolerate more.
    if "v5" in kind:
        return 1024
    return 2048


def mlp_forward(x, params, tb=None, x_is_feature_major=False, return_feature_major=False):
    """Forward pass.

    x: (n, 2) float32 (default) or (2, n) if x_is_feature_major=True.
    Returns (n, 1) by default, or (1, n) if return_feature_major=True
    (feature-major in/out skips two wrapper-side HBM transpose passes).
    """
    w1, b1, w2s, b2s, w3, b3 = params
    width = w1.shape[1]
    num_inner = w2s.shape[0]
    assert num_inner >= 1, "num_inner must be >= 1 (spec default is 1)"

    if x_is_feature_major:
        assert x.shape[0] == 2, x.shape
        xf, n = x, x.shape[1]
    else:
        assert x.shape[1] == 2, x.shape
        xf, n = x.T, x.shape[0]  # fused into the producer under jit

    # lane-dense batch tile: big enough to amortize per-grid-step overhead,
    # but keep >= 2 tiles so a v7x chip can use both TensorCores.
    if tb is None:
        tb = _default_tile_batch()
    tb = max(128, (tb // 128) * 128)
    two_tile_cap = max(128, pl.cdiv(pl.cdiv(n, 2), 128) * 128)
    tb = min(tb, two_tile_cap)
    n_pad = pl.cdiv(n, tb) * tb
    grid = (n_pad // tb,)

    x_t = xf if n_pad == n else jnp.pad(xf, ((0, 0), (0, n_pad - n)))

    # weights in kernel layout (transposed so the kernel computes W^T @ x^T).
    w1t = w1.T                              # (W, 2)
    b1c = b1.reshape(width, 1)              # (W, 1)
    w2t = jnp.transpose(w2s, (0, 2, 1))     # (L, W, W)
    b2c = b2s.reshape(num_inner, width, 1)  # (L, W, 1)
    w3c = w3.reshape(width, 1)              # (W, 1)
    b3s = b3.reshape(1, 1)                  # (1, 1) -> SMEM scalar

    weight_bytes = 4 * (w1t.size + b1c.size + w2t.size + b2c.size + w3c.size)
    io_tile_bytes = 4 * tb * (2 + 1) * 2            # x/out tiles, double-buffered
    work_bytes = 4 * tb * (pl.cdiv(width, 8) * 8) * 3  # h/z working set (rough)

    flops = n_pad * (2 * 2 * width + num_inner * 2 * width * width + 2 * width)
    bytes_accessed = (x_t.size + n_pad) * 4 + weight_bytes

    def run(single_buffer_weights):
        def weight_spec(shape):
            ndim = len(shape)
            index_map = lambda i, _n=ndim: (0,) * _n
            if single_buffer_weights:
                # constant index_map -> one buffer is enough; halves weight VMEM.
                return pl.BlockSpec(shape, index_map, pipeline_mode=pl.Buffered(1))
            return pl.BlockSpec(shape, index_map)

        weight_bufs = 1 if single_buffer_weights else 2
        vmem_needed = weight_bytes * weight_bufs + io_tile_bytes + work_bytes
        cp_kwargs = dict(dimension_semantics=("parallel",))
        if vmem_needed > (24 << 20):
            if vmem_needed > (60 << 20):
                # TODO(synk): stream w2s per layer (layer grid axis) instead of
                # keeping all inner weights resident when width/num_inner grow.
                raise ValueError(
                    "Resident weights + tiles exceed per-core VMEM headroom; "
                    "reduce tb or stream inner-layer weights.")
            cp_kwargs["vmem_limit_bytes"] = min(int(vmem_needed * 1.5), 64 << 20)

        return pl.pallas_call(
            mlp_kernel,
            out_shape=jax.ShapeDtypeStruct((1, n_pad), jnp.float32),
            grid=grid,
            in_specs=[
                pl.BlockSpec((2, tb), lambda i: (0, i)),            # x tile
                weight_spec(w1t.shape),                             # VMEM-resident weights
                weight_spec(b1c.shape),
                weight_spec(w2t.shape),
                weight_spec(b2c.shape),
                weight_spec(w3c.shape),
                pl.BlockSpec(memory_space=pltpu.MemorySpace.SMEM),  # b3 scalar
            ],
            out_specs=pl.BlockSpec((1, tb), lambda i: (0, i)),
            compiler_params=pltpu.CompilerParams(**cp_kwargs),
            cost_estimate=pl.CostEstimate(
                flops=flops,
                transcendentals=n_pad * width * num_inner,
                bytes_accessed=bytes_accessed,
            ),
        )(x_t, w1t, b1c, w2t, b2c, w3c, b3s)

    if hasattr(pl, "Buffered"):
        try:
            out = run(True)
        except Exception:
            # jax builds where BlockSpec.pipeline_mode / Buffered(1) is not
            # supported by the TPU pipeliner: fall back to default buffering.
            out = run(False)
    else:
        out = run(False)

    out = out[:, :n]                       # drop batch padding
    return out if return_feature_major else out.T   # (1, n) or (n, 1)


def init_params(key, width=20, num_inner=1):
    ks = jax.random.split(key, 6)
    w1 = jax.random.normal(ks[0], (2, width), jnp.float32) * 0.5
    b1 = jax.random.normal(ks[1], (1, width), jnp.float32) * 0.1
    w2 = jax.random.normal(ks[2], (num_inner, width, width), jnp.float32) * 0.3
    b2 = jax.random.normal(ks[3], (num_inner, 1, width), jnp.float32) * 0.1
    w3 = jax.random.normal(ks[4], (width, 1), jnp.float32) * 0.5
    b3 = jax.random.normal(ks[5], (1, 1), jnp.float32) * 0.1
    return (w1, b1, w2, b2, w3, b3)


def mlp_reference(x, params):
    w1, b1, w2s, b2s, w3, b3 = params
    h = x @ w1 + b1
    for l in range(w2s.shape[0]):
        h = jnp.tanh(h @ w2s[l] + b2s[l])
    return h @ w3 + b3


if __name__ == "__main__":
    key = jax.random.PRNGKey(0)
    k_x, k_p = jax.random.split(key)

    batch, width, num_inner = 300, 20, 1   # non-multiple of 128 -> exercises padding
    x = jax.random.normal(k_x, (batch, 2), jnp.float32)
    params = init_params(k_p, width=width, num_inner=num_inner)

    # default (auto) tile: capped so the grid has 2 tiles here.
    out = jax.block_until_ready(mlp_forward(x, params))
    ref = mlp_reference(x, params)
    assert out.shape == (batch, 1), out.shape
    assert jnp.allclose(out, ref, atol=1e-5, rtol=1e-5)

    # feature-major fast path: no wrapper-side transpose passes, same numerics.
    out_fm = jax.block_until_ready(
        mlp_forward(x.T, params, x_is_feature_major=True, return_feature_major=True))
    assert out_fm.shape == (1, batch), out_fm.shape
    assert jnp.allclose(out_fm.T, ref, atol=1e-5, rtol=1e-5)

    print("KERNEL_OK")
</pallas_src>

<mosaic_0001>
module attributes {stable_mosaic.version = 11 : i64} {
  func.func @mlp_kernel(%arg0: i32, %arg1: memref<2x256xf32, #tpu.memory_space<vmem>>, %arg2: memref<20x2xf32, #tpu.memory_space<vmem>>, %arg3: memref<20x1xf32, #tpu.memory_space<vmem>>, %arg4: memref<1x20x20xf32, #tpu.memory_space<vmem>>, %arg5: memref<1x20x1xf32, #tpu.memory_space<vmem>>, %arg6: memref<20x1xf32, #tpu.memory_space<vmem>>, %arg7: memref<1x1xf32, #tpu.memory_space<smem>>, %arg8: memref<1x256xf32, #tpu.memory_space<vmem>>) attributes {dimension_semantics = [#tpu.dimension_semantics<parallel>], iteration_bounds = array<i64: 2>, scalar_prefetch = 0 : i64, scratch_operands = 0 : i64, tpu.core_type = #tpu.core_type<tc>, window_params = [{transform_indices = @transform_0, window_bounds = array<i64: 2, 256>}, {pipeline_mode = #tpu.pipeline_mode<synchronous>, transform_indices = @transform_1, window_bounds = array<i64: 20, 2>}, {pipeline_mode = #tpu.pipeline_mode<synchronous>, transform_indices = @transform_2, window_bounds = array<i64: 20, 1>}, {pipeline_mode = #tpu.pipeline_mode<synchronous>, transform_indices = @transform_3, window_bounds = array<i64: 1, 20, 20>}, {pipeline_mode = #tpu.pipeline_mode<synchronous>, transform_indices = @transform_4, window_bounds = array<i64: 1, 20, 1>}, {pipeline_mode = #tpu.pipeline_mode<synchronous>, transform_indices = @transform_5, window_bounds = array<i64: 20, 1>}, {transform_indices = @transform_6, window_bounds = array<i64: 1, 1>}, {transform_indices = @transform_7, window_bounds = array<i64: 1, 256>}]} {
    %c0 = arith.constant 0 : index
    %c0_0 = arith.constant 0 : index
    %0 = vector.load %arg1[%c0, %c0_0] : memref<2x256xf32, #tpu.memory_space<vmem>>, vector<2x256xf32>
    %c0_1 = arith.constant 0 : index
    %c0_2 = arith.constant 0 : index
    %1 = vector.load %arg2[%c0_1, %c0_2] : memref<20x2xf32, #tpu.memory_space<vmem>>, vector<20x2xf32>
    %2 = vector.extract_strided_slice %1 {offsets = [0, 0], sizes = [20, 1], strides = [1, 1]} : vector<20x2xf32> to vector<20x1xf32>
    %3 = vector.extract_strided_slice %0 {offsets = [0, 0], sizes = [1, 256], strides = [1, 1]} : vector<2x256xf32> to vector<1x256xf32>
    %4 = vector.broadcast %2 : vector<20x1xf32> to vector<20x256xf32>
    %5 = vector.broadcast %3 : vector<1x256xf32> to vector<20x256xf32>
    %6 = arith.mulf %4, %5 : vector<20x256xf32>
    %7 = vector.extract_strided_slice %1 {offsets = [0, 1], sizes = [20, 1], strides = [1, 1]} : vector<20x2xf32> to vector<20x1xf32>
    %8 = vector.extract_strided_slice %0 {offsets = [1, 0], sizes = [1, 256], strides = [1, 1]} : vector<2x256xf32> to vector<1x256xf32>
    %9 = vector.broadcast %7 : vector<20x1xf32> to vector<20x256xf32>
    %10 = vector.broadcast %8 : vector<1x256xf32> to vector<20x256xf32>
    %11 = arith.mulf %9, %10 : vector<20x256xf32>
    %12 = arith.addf %6, %11 : vector<20x256xf32>
    %c0_3 = arith.constant 0 : index
    %c0_4 = arith.constant 0 : index
    %13 = vector.load %arg3[%c0_3, %c0_4] : memref<20x1xf32, #tpu.memory_space<vmem>>, vector<20x1xf32>
    %14 = vector.broadcast %13 : vector<20x1xf32> to vector<20x256xf32>
    %15 = arith.addf %12, %14 : vector<20x256xf32>
    %c0_i32 = arith.constant 0 : i32
    %16 = arith.index_cast %c0_i32 : i32 to index
    %c0_5 = arith.constant 0 : index
    %c0_6 = arith.constant 0 : index
    %17 = vector.load %arg4[%16, %c0_5, %c0_6] : memref<1x20x20xf32, #tpu.memory_space<vmem>>, vector<1x20x20xf32>
    %18 = vector.shape_cast %17 : vector<1x20x20xf32> to vector<20x20xf32>
    %cst = arith.constant dense<0.000000e+00> : vector<20x256xf32>
    %19 = tpu.matmul %18, %15, %cst {dimension_numbers = #tpu.dot_dimension_numbers<[1], [0], [0], [1], [0, 0, 1, 1], [], []>} : vector<20x20xf32>, vector<20x256xf32>, vector<20x256xf32> -> vector<20x256xf32>
    %20 = arith.index_cast %c0_i32 : i32 to index
    %c0_7 = arith.constant 0 : index
    %c0_8 = arith.constant 0 : index
    %21 = vector.load %arg5[%20, %c0_7, %c0_8] : memref<1x20x1xf32, #tpu.memory_space<vmem>>, vector<1x20x1xf32>
    %22 = vector.shape_cast %21 : vector<1x20x1xf32> to vector<20x1xf32>
    %23 = vector.broadcast %22 : vector<20x1xf32> to vector<20x256xf32>
    %24 = arith.addf %19, %23 : vector<20x256xf32>
    %25 = math.tanh %24 : vector<20x256xf32>
    %c1_i32 = arith.constant 1 : i32
    %c0_9 = arith.constant 0 : index
    %c0_10 = arith.constant 0 : index
    %26 = vector.load %arg6[%c0_9, %c0_10] : memref<20x1xf32, #tpu.memory_space<vmem>>, vector<20x1xf32>
    %27 = vector.broadcast %26 : vector<20x1xf32> to vector<20x256xf32>
    %28 = arith.mulf %27, %25 : vector<20x256xf32>
    %cst_11 = arith.constant dense<0.000000e+00> : vector<256xf32>
    %29 = vector.multi_reduction <add>, %28, %cst_11 [0] : vector<20x256xf32> to vector<256xf32>
    %30 = vector.shape_cast %29 : vector<256xf32> to vector<1x256xf32>
    %c0_12 = arith.constant 0 : index
    %c0_13 = arith.constant 0 : index
    %31 = memref.load %arg7[%c0_12, %c0_13] : memref<1x1xf32, #tpu.memory_space<smem>>
    %32 = vector.broadcast %31 : f32 to vector<1x256xf32>
    %33 = arith.addf %30, %32 : vector<1x256xf32>
    %c0_14 = arith.constant 0 : index
    %c0_15 = arith.constant 0 : index
    %34 = vector.load %arg8[%c0_14, %c0_15] : memref<1x256xf32, #tpu.memory_space<vmem>>, vector<1x256xf32>
    tpu.vector_store %arg8[%c0_14, %c0_15], %33 {strides = array<i32>} : memref<1x256xf32, #tpu.memory_space<vmem>>, vector<1x256xf32>,
    return
  }
  func.func @transform_0(%arg0: i32) -> (i32, i32) {
    %c0_i32 = arith.constant 0 : i32
    %c0_i32_0 = arith.constant 0 : i32
    return %c0_i32, %arg0 : i32, i32
  }
  func.func @transform_1(%arg0: i32) -> (i32, i32) {
    %c0_i32 = arith.constant 0 : i32
    %c0_i32_0 = arith.constant 0 : i32
    %c0_i32_1 = arith.constant 0 : i32
    return %c0_i32, %c0_i32_0 : i32, i32
  }
  func.func @transform_2(%arg0: i32) -> (i32, i32) {
    %c0_i32 = arith.constant 0 : i32
    %c0_i32_0 = arith.constant 0 : i32
    %c0_i32_1 = arith.constant 0 : i32
    return %c0_i32, %c0_i32_0 : i32, i32
  }
  func.func @transform_3(%arg0: i32) -> (i32, i32, i32) {
    %c0_i32 = arith.constant 0 : i32
    %c0_i32_0 = arith.constant 0 : i32
    %c0_i32_1 = arith.constant 0 : i32
    %c0_i32_2 = arith.constant 0 : i32
    return %c0_i32, %c0_i32_0, %c0_i32_1 : i32, i32, i32
  }
  func.func @transform_4(%arg0: i32) -> (i32, i32, i32) {
    %c0_i32 = arith.constant 0 : i32
    %c0_i32_0 = arith.constant 0 : i32
    %c0_i32_1 = arith.constant 0 : i32
    %c0_i32_2 = arith.constant 0 : i32
    return %c0_i32, %c0_i32_0, %c0_i32_1 : i32, i32, i32
  }
  func.func @transform_5(%arg0: i32) -> (i32, i32) {
    %c0_i32 = arith.constant 0 : i32
    %c0_i32_0 = arith.constant 0 : i32
    %c0_i32_1 = arith.constant 0 : i32
    return %c0_i32, %c0_i32_0 : i32, i32
  }
  func.func @transform_6(%arg0: i32) -> (i32, i32) {
    %c0_i32 = arith.constant 0 : i32
    %c0_i32_0 = arith.constant 0 : i32
    %c0_i32_1 = arith.constant 0 : i32
    return %c0_i32, %c0_i32_0 : i32, i32
  }
  func.func @transform_7(%arg0: i32) -> (i32, i32) {
    %c0_i32 = arith.constant 0 : i32
    %c0_i32_0 = arith.constant 0 : i32
    return %c0_i32, %arg0 : i32, i32
  }
}

module attributes {stable_mosaic.version = 11 : i64} {
  func.func @mlp_kernel(%arg0: i32, %arg1: memref<2x256xf32, #tpu.memory_space<vmem>>, %arg2: memref<20x2xf32, #tpu.memory_space<vmem>>, %arg3: memref<20x1xf32, #tpu.memory_space<vmem>>, %arg4: memref<1x20x20xf32, #tpu.memory_space<vmem>>, %arg5: memref<1x20x1xf32, #tpu.memory_space<vmem>>, %arg6: memref<20x1xf32, #tpu.memory_space<vmem>>, %arg7: memref<1x1xf32, #tpu.memory_space<smem>>, %arg8: memref<1x256xf32, #tpu.memory_space<vmem>>) attributes {dimension_semantics = [#tpu.dimension_semantics<parallel>], iteration_bounds = array<i64: 2>, scalar_prefetch = 0 : i64, scratch_operands = 0 : i64, tpu.core_type = #tpu.core_type<tc>, window_params = [{transform_indices = @transform_0, window_bounds = array<i64: 2, 256>}, {pipeline_mode = #tpu.pipeline_mode<synchronous>, transform_indices = @transform_1, window_bounds = array<i64: 20, 2>}, {pipeline_mode = #tpu.pipeline_mode<synchronous>, transform_indices = @transform_2, window_bounds = array<i64: 20, 1>}, {pipeline_mode = #tpu.pipeline_mode<synchronous>, transform_indices = @transform_3, window_bounds = array<i64: 1, 20, 20>}, {pipeline_mode = #tpu.pipeline_mode<synchronous>, transform_indices = @transform_4, window_bounds = array<i64: 1, 20, 1>}, {pipeline_mode = #tpu.pipeline_mode<synchronous>, transform_indices = @transform_5, window_bounds = array<i64: 20, 1>}, {transform_indices = @transform_6, window_bounds = array<i64: 1, 1>}, {transform_indices = @transform_7, window_bounds = array<i64: 1, 256>}]} {
    %c0 = arith.constant 0 : index
    %c0_0 = arith.constant 0 : index
    %0 = vector.load %arg1[%c0, %c0_0] : memref<2x256xf32, #tpu.memory_space<vmem>>, vector<2x256xf32>
    %c0_1 = arith.constant 0 : index
    %c0_2 = arith.constant 0 : index
    %1 = vector.load %arg2[%c0_1, %c0_2] : memref<20x2xf32, #tpu.memory_space<vmem>>, vector<20x2xf32>
    %2 = vector.extract_strided_slice %1 {offsets = [0, 0], sizes = [20, 1], strides = [1, 1]} : vector<20x2xf32> to vector<20x1xf32>
    %3 = vector.extract_strided_slice %0 {offsets = [0, 0], sizes = [1, 256], strides = [1, 1]} : vector<2x256xf32> to vector<1x256xf32>
    %4 = vector.broadcast %2 : vector<20x1xf32> to vector<20x256xf32>
    %5 = vector.broadcast %3 : vector<1x256xf32> to vector<20x256xf32>
    %6 = arith.mulf %4, %5 : vector<20x256xf32>
    %7 = vector.extract_strided_slice %1 {offsets = [0, 1], sizes = [20, 1], strides = [1, 1]} : vector<20x2xf32> to vector<20x1xf32>
    %8 = vector.extract_strided_slice %0 {offsets = [1, 0], sizes = [1, 256], strides = [1, 1]} : vector<2x256xf32> to vector<1x256xf32>
    %9 = vector.broadcast %7 : vector<20x1xf32> to vector<20x256xf32>
    %10 = vector.broadcast %8 : vector<1x256xf32> to vector<20x256xf32>
    %11 = arith.mulf %9, %10 : vector<20x256xf32>
    %12 = arith.addf %6, %11 : vector<20x256xf32>
    %c0_3 = arith.constant 0 : index
    %c0_4 = arith.constant 0 : index
    %13 = vector.load %arg3[%c0_3, %c0_4] : memref<20x1xf32, #tpu.memory_space<vmem>>, vector<20x1xf32>
    %14 = vector.broadcast %13 : vector<20x1xf32> to vector<20x256xf32>
    %15 = arith.addf %12, %14 : vector<20x256xf32>
    %c0_i32 = arith.constant 0 : i32
    %16 = arith.index_cast %c0_i32 : i32 to index
    %c0_5 = arith.constant 0 : index
    %c0_6 = arith.constant 0 : index
    %17 = vector.load %arg4[%16, %c0_5, %c0_6] : memref<1x20x20xf32, #tpu.memory_space<vmem>>, vector<1x20x20xf32>
    %18 = vector.shape_cast %17 : vector<1x20x20xf32> to vector<20x20xf32>
    %cst = arith.constant dense<0.000000e+00> : vector<20x256xf32>
    %19 = tpu.matmul %18, %15, %cst {dimension_numbers = #tpu.dot_dimension_numbers<[1], [0], [0], [1], [0, 0, 1, 1], [], []>} : vector<20x20xf32>, vector<20x256xf32>, vector<20x256xf32> -> vector<20x256xf32>
    %20 = arith.index_cast %c0_i32 : i32 to index
    %c0_7 = arith.constant 0 : index
    %c0_8 = arith.constant 0 : index
    %21 = vector.load %arg5[%20, %c0_7, %c0_8] : memref<1x20x1xf32, #tpu.memory_space<vmem>>, vector<1x20x1xf32>
    %22 = vector.shape_cast %21 : vector<1x20x1xf32> to vector<20x1xf32>
    %23 = vector.broadcast %22 : vector<20x1xf32> to vector<20x256xf32>
    %24 = arith.addf %19, %23 : vector<20x256xf32>
    %25 = math.tanh %24 : vector<20x256xf32>
    %c1_i32 = arith.constant 1 : i32
    %c0_9 = arith.constant 0 : index
    %c0_10 = arith.constant 0 : index
    %26 = vector.load %arg6[%c0_9, %c0_10] : memref<20x1xf32, #tpu.memory_space<vmem>>, vector<20x1xf32>
    %27 = vector.broadcast %26 : vector<20x1xf32> to vector<20x256xf32>
    %28 = arith.mulf %27, %25 : vector<20x256xf32>
    %cst_11 = arith.constant dense<0.000000e+00> : vector<256xf32>
    %29 = vector.multi_reduction <add>, %28, %cst_11 [0] : vector<20x256xf32> to vector<256xf32>
    %30 = vector.shape_cast %29 : vector<256xf32> to vector<1x256xf32>
    %c0_12 = arith.constant 0 : index
    %c0_13 = arith.constant 0 : index
    %31 = memref.load %arg7[%c0_12, %c0_13] : memref<1x1xf32, #tpu.memory_space<smem>>
    %32 = vector.broadcast %31 : f32 to vector<1x256xf32>
    %33 = arith.addf %30, %32 : vector<1x256xf32>
    %c0_14 = arith.constant 0 : index
    %c0_15 = arith.constant 0 : index
    %34 = vector.load %arg8[%c0_14, %c0_15] : memref<1x256xf32, #tpu.memory_space<vmem>>, vector<1x256xf32>
    tpu.vector_store %arg8[%c0_14, %c0_15], %33 {strides = array<i32>} : memref<1x256xf32, #tpu.memory_space<vmem>>, vector<1x256xf32>,
    return
  }
  func.func @transform_0(%arg0: i32) -> (i32, i32) {
    %c0_i32 = arith.constant 0 : i32
    %c0_i32_0 = arith.constant 0 : i32
    return %c0_i32, %arg0 : i32, i32
  }
  func.func @transform_1(%arg0: i32) -> (i32, i32) {
    %c0_i32 = arith.constant 0 : i32
    %c0_i32_0 = arith.constant 0 : i32
    %c0_i32_1 = arith.constant 0 : i32
    return %c0_i32, %c0_i32_0 : i32, i32
  }
  func.func @transform_2(%arg0: i32) -> (i32, i32) {
    %c0_i32 = arith.constant 0 : i32
    %c0_i32_0 = arith.constant 0 : i32
    %c0_i32_1 = arith.constant 0 : i32
    return %c0_i32, %c0_i32_0 : i32, i32
  }
  func.func @transform_3(%arg0: i32) -> (i32, i32, i32) {
    %c0_i32 = arith.constant 0 : i32
    %c0_i32_0 = arith.constant 0 : i32
    %c0_i32_1 = arith.constant 0 : i32
    %c0_i32_2 = arith.constant 0 : i32
    return %c0_i32, %c0_i32_0, %c0_i32_1 : i32, i32, i32
  }
  func.func @transform_4(%arg0: i32) -> (i32, i32, i32) {
    %c0_i32 = arith.constant 0 : i32
    %c0_i32_0 = arith.constant 0 : i32
    %c0_i32_1 = arith.constant 0 : i32
    %c0_i32_2 = arith.constant 0 : i32
    return %c0_i32, %c0_i32_0, %c0_i32_1 : i32, i32, i32
  }
  func.func @transform_5(%arg0: i32) -> (i32, i32) {
    %c0_i32 = arith.constant 0 : i32
    %c0_i32_0 = arith.constant 0 : i32
    %c0_i32_1 = arith.constant 0 : i32
    return %c0_i32, %c0_i32_0 : i32, i32
  }
  func.func @transform_6(%arg0: i32) -> (i32, i32) {
    %c0_i32 = arith.constant 0 : i32
    %c0_i32_0 = arith.constant 0 : i32
    %c0_i32_1 = arith.constant 0 : i32
    return %c0_i32, %c0_i32_0 : i32, i32
  }
  func.func @transform_7(%arg0: i32) -> (i32, i32) {
    %c0_i32 = arith.constant 0 : i32
    %c0_i32_0 = arith.constant 0 : i32
    return %c0_i32, %arg0 : i32, i32
  }
}

</mosaic_0001>

<bundles_post_ra>
// kernel: tpu_custom_call.1
= control target key start
LH: loop header
LB: loop body
LE: loop exit
PB: predicated region body
PF: predicated region fallthrough
CT: control target
= control target key end

     0   :  { %s929_s0 = inlined_call_operand.vmem [shape: f32[2,512], index: 0, kind: input, shape index: {}]   ;;  %s930_s1 = inlined_call_operand.vmem [shape: f32[20,2], index: 1, kind: input, shape index: {}]   ;;  %s931_s2 = inlined_call_operand.vmem [shape: f32[20,1], index: 2, kind: input, shape index: {}]   ;;  %s932_s3 = inlined_call_operand.vmem [shape: f32[1,20,20], index: 3, kind: input, shape index: {}]   ;;  %s933_s4 = inlined_call_operand.vmem [shape: f32[1,20,1], index: 4, kind: input, shape index: {}]   ;;  %s934_s5 = inlined_call_operand.vmem [shape: f32[20,1], index: 5, kind: input, shape index: {}]   ;;  %s935_s6 = inlined_call_operand.<no memory space> [shape: f32[1,1], index: 6, kind: input, shape index: {}]   ;;  %s936_s7 = inlined_call_operand.hbm [shape: f32[1,512], index: 7, kind: output, shape index: {}]  }
   0x1   :  { %12 = sst [smem:[#allocation2]] %s935_s6 }
   0x2   :  { %13 = vsyncpa [#allocation4], 0 }
   0x3   :  { %15 = vsyncpa [#allocation4 + $0x1], 0  ;;  %s790_s26 = smov 0   ;;  %s792_s27 = smov 0  }
   0x4   :  { %s794_s28 = smov 0   ;;  %s796_s29 = smov 0  }
   0x5 LB: > { %s594_s6 = sadd.s32 4294967295, %s743_s29   ;;  %s595_s30 = sadd.s32 4294967294, %s743_s29   ;;  %s743_s29 = sphi %s796_s29, %s942_s29   ;;  %s739_s28 = sphi %s794_s28, %s941_s28   ;;  %s735_s27 = sphi %s792_s27, %s940_s27   ;;  %s731_s26 = sphi %s790_s26, %s939_s26  }
   0x6   : > { %s813_s8 = sadd.s32 1, %s743_s29   ;;  %s180_s9 = sadd.s32 1, %s739_s28 }
   0x7   : > { %s177_s10 = ssub.s32 %s743_s29, %s813_s8  ;;  %p190_p0 = scmp.ne.s32.totalorder %s739_s28, %s735_s27 }
   0x8   : > { %p178_p1 = scmp.eq.s32.totalorder %s177_s10, 0  ;;  %p191_p2 = scmp.eq.s32.totalorder %s594_s6, 1 }
   0x9   : > { %p196_p3 = scmp.ne.s32.totalorder %s735_s27, %s731_s26  ;;  %p197_p4 = scmp.eq.s32.totalorder %s595_s30, 1 }
   0xa   : > { %s825_s11 = scalar_select %p178_p1, %s739_s28, %s180_s9  }
   0xb   : > { %p827_p5 = por %p191_p2, %p190_p0  ;;  %p831_p6 = por %p197_p4, %p196_p3 }
   0xc   : > { %p598_p7 = scmp.ge.s32.totalorder %s743_s29, 1  ;;  %p242_p8 = scmp.lt.s32.totalorder %s743_s29, 3 }
   0xe   : > { %p243_p9 = pnand %p598_p7, %p242_p8 }
   0xf   : > { %s875_s23 = sshll.u32 (!%p243_p9), %s594_s6, 1  ;;  %s505_s19 = sld [smem:[#allocation2]] (!%p243_p9) }
  0x10   : > { %246 = sbr.rel (%p243_p9) target bundleno = 339 (0x153), region = 48  ;;  %p275_p10 = scmp.lt.s32.totalorder (!%p243_p9), %s875_s23, 3 }
  0x11   : > { %s271_s20 = sand.u32 (!%p243_p9), 1, %s735_s27   ;;  %s701_s17 = scalar_lea.hbm (!%p243_p9), %s936_s7, 4 }
  0x12   : > { %s599_s21 = sshll.u32 (!%p243_p9), %s271_s20, 1  ;;  %s521_s6 = scalar_lea.sflag (!%p243_p9), [#allocation4], %s271_s20 }
  0x13   : > { %s273_s30 = scalar_lea.vmem (!%p243_p9), [#allocation3], %s599_s21 }
  0x14   : > { %s533_s9 = sshll.u32 (!%p243_p9), %s273_s30, 4  ;;  %s534_s9 = int_to_ptr.vmem [resolvable:$true] %s533_s9 }
  0x15   : > { %v284_v0 = vld [vmem:[%s930_s1 + $0x10] sm:$0xf]  ;;  %v283_v1 = vld [vmem:[%s930_s1 + $0x8] sm:$0xff]  ;;  %v745_v2 = vmov 1   ;;  %v746_v3 = vmov 0   ;;  %v282_v4 = vld [vmem:[%s930_s1] sm:$0xff] }
  0x16   : > { %661 = vset.pattern.permute.xlu0 %v745_v2  ;;  %663 = vset.pattern.permute.xlu1 %v746_v3  ;;  %v343_v5 = vld [vmem:[%s931_s2] sm:$0xff]  ;;  %v345_v6 = vld [vmem:[%s931_s2 + $0x10] sm:$0xf]  ;;  %v344_v7 = vld [vmem:[%s931_s2 + $0x8] sm:$0xff]  ;;  %s276_s24 = scalar_select %p275_p10, %s875_s23, 3  ;;  %vm398_vm0 = vcmask 1043456  }
  0x17   : > { %322 = vperm.xlu0 %661, %v284_v0   ;;  %292 = vperm.xlu1 %663, %v283_v1   ;;  %v464_v8 = vld [vmem:[%s934_s5 + $0x8] sm:$0xff]  ;;  %v370_v9 = vld [vmem:[%s933_s4] sm:$0xff]  ;;  %v372_v11 = vld [vmem:[%s933_s4 + $0x10] sm:$0xf]  ;;  %vm388_vm1 = vcmask 162816   ;;  %vm512_vm2 = vcmask 1040384  }
  0x18   : > { %665 = vset.pattern.permute.xlu2 %v746_v3  ;;  %v371_v10 = vld [vmem:[%s933_s4 + $0x8] sm:$0xff]  ;;  %v463_v12 = vld [vmem:[%s934_s5] sm:$0xff]  ;;  %v465_v13 = vld [vmem:[%s934_s5 + $0x10] sm:$0xf]  ;;  %s601_s25 = sshll.u32 %s276_s24, 1 }
  0x19   : > { %287 = vperm.xlu2 %665, %v282_v4   ;;  %s278_s10 = scalar_lea.vmem %s929_s0, %s601_s25  ;;  %v367_v56 = vld [vmem:[%s932_s3] sm:$0xff]  ;;  %v368_v57 = vld [vmem:[%s932_s3 + $0x8] sm:$0xff]  ;;  %v369_v58 = vld [vmem:[%s932_s3 + $0x10] sm:$0xf]  ;;  %s531_s25 = scalar_lea.hbm %s936_s7, %s875_s23 }
  0x1a   : > { %v281_v17 = vld [vmem:[%s278_s10] sm:$0xf]  ;;  %s535_s10 = sshll.u32 %s531_s25, 4  ;;  %s536_s10 = int_to_ptr.hbm [resolvable:$true] %s535_s10 }
  0x1b   : > { %v301_v18 = vperm.slane %v281_v17, 0  ;;  %v302_v19 = vperm.slane %v281_v17, 2  ;;  %v325_v20 = vperm.slane %v281_v17, 1  ;;  %v326_v21 = vperm.slane %v281_v17, 3  ;;  %s695_s14 = sshra.s32 %s536_s10, 4  ;;  %s696_s14 = int_to_ptr.hbm [resolvable:$true] %s695_s14 }
  0x1c   : > { %s697_s23 = scalar_lea.hbm %s696_s14, 2  ;;  %p702_p0 = scmp.lt.s32.totalorder %s696_s14, %s936_s7 }
  0x1d   : > { %v305_v25 = vperm.slane %v301_v18, 0  ;;  %v306_v26 = vperm.slane %v302_v19, 0  ;;  %v329_v27 = vperm.slane %v325_v20, 1  ;;  %v330_v28 = vperm.slane %v326_v21, 1  ;;  %p698_p11 = scmp.ne.s32.totalorder %s696_s14, %s697_s23  ;;  %p703_p1 = scmp.lt.s32.totalorder %s701_s17, %s697_s23 }
  0x1f   : > { %662 = vset.pattern.permute.xlu0 %v746_v3  ;;  %664 = vset.pattern.permute.xlu1 %v745_v2  ;;  %p699_p12 = pnand %p698_p11, %p827_p5  ;;  %p704_p2 = por %p703_p1, %p702_p0 }
  0x20   : > { %297 = vperm.xlu0 %662, %v284_v0   ;;  %318 = vperm.xlu1 %664, %v283_v1  }
  0x21   : > { %666 = vset.pattern.permute.xlu2 %v745_v2  ;;  %p700_p13 = pneg %p699_p12 }
  0x22   : > { %314 = vperm.xlu2 %666, %v282_v4  }
  0x23   : > { %p705_p3 = pnand %p704_p2, %p700_p13 }
  0x28   : > { %348 = vperm.xlu0 %662, %v343_v5   ;;  %667 = vset.pattern.permute.xlu1 %v746_v3 }
  0x29   : > { %358 = vperm.xlu1 %667, %v345_v6  }
  0x2a   : > { %668 = vset.pattern.permute.xlu2 %v746_v3 }
  0x2b   : > { %353 = vperm.xlu2 %668, %v344_v7  }
  0x30   : > { %473 = vperm.xlu0 %662, %v464_v8  }
  0x31   : > { %375 = vperm.xlu1 %667, %v370_v9  }
  0x33   : > { %380 = vperm.xlu2 %668, %v371_v10  }
  0x39   : > { %385 = vperm.xlu1 %667, %v372_v11  }
  0x3b   : > { %468 = vperm.xlu2 %668, %v463_v12  }
  0x41   : > { %478 = vperm.xlu1 %667, %v465_v13  }
  0x73   : > { %v288_v14 = vpop.permute.xlu2 %287 }
  0x74   : > { %v307_v36 = vmul.f32 %v305_v25, %v288_v14  ;;  %v308_v42 = vmul.f32 %v306_v26, %v288_v14 }
  0x7c   : > { %v315_v23 = vpop.permute.xlu2 %314 }
  0x7d   : > { %v331_v38 = vmul.f32 %v329_v27, %v315_v23  ;;  %v332_v43 = vmul.f32 %v330_v28, %v315_v23 }
  0x7f   : > { %v337_v51 = vadd.f32 %v331_v38, %v307_v36  ;;  %v338_v53 = vadd.f32 %v332_v43, %v308_v42 }
  0x85   : > { %v354_v48 = vpop.permute.xlu2 %353 }
  0x89   : > { %v293_v15 = vpop.permute.xlu1 %292  ;;  %v323_v16 = vpop.permute.xlu0 %322 }
  0x8a   : > { %v309_v33 = vmul.f32 %v305_v25, %v293_v15  ;;  %v335_v34 = vmul.f32 %v329_v27, %v323_v16  ;;  %v336_v35 = vmul.f32 %v330_v28, %v323_v16  ;;  %v310_v37 = vmul.f32 %v306_v26, %v293_v15 }
  0x8d   : > { %v381_v60 = vpop.permute.xlu2 %380 }
  0x92   : > { %v319_v22 = vpop.permute.xlu1 %318  ;;  %v298_v24 = vpop.permute.xlu0 %297 }
  0x93   : > { %v311_v29 = vmul.f32 %v305_v25, %v298_v24  ;;  %v312_v30 = vmul.f32 %v306_v26, %v298_v24  ;;  %v333_v31 = vmul.f32 %v329_v27, %v319_v22  ;;  %v334_v32 = vmul.f32 %v330_v28, %v319_v22 }
  0x95   : > { %v341_v39 = vadd.f32 %v335_v34, %v311_v29  ;;  %v342_v40 = vadd.f32 %v336_v35, %v312_v30  ;;  %v339_v41 = vadd.f32 %v333_v31, %v309_v33  ;;  %v340_v45 = vadd.f32 %v334_v32, %v310_v37  ;;  %v469_v16 = vpop.permute.xlu2 %468 }
  0x97   : > { %v363_v50 = vadd.f32 %v354_v48, %v339_v41  ;;  %v364_v52 = vadd.f32 %v354_v48, %v340_v45  ;;  %v506_v41 = vstv %s505_s19 }
  0x9a   : > { %v349_v49 = vpop.permute.xlu0 %348 }
  0x9b   : > { %v359_v44 = vpop.permute.xlu1 %358  ;;  %v361_v54 = vadd.f32 %v349_v49, %v337_v51  ;;  %v362_v55 = vadd.f32 %v349_v49, %v338_v53 }
  0x9c   : > { %v365_v46 = vadd.f32 %v359_v44, %v341_v39  ;;  %v366_v47 = vadd.f32 %v359_v44, %v342_v40  ;;  %v515_v44 = vlaneseq }
  0x9e   : > { %602 = vmatpush.msk.msra.mxu0 %vm398_vm0, %v365_v46  ;;  %614 = vmatpush.msk.msra.mxu2 %vm398_vm0, %v365_v46  ;;  %vm517_vm3 = vcmp.lt.s32.totalorder %v515_v44, 256 }
  0x9f   : > { %606 = vmatpush.msk.msra.mxu1 %vm398_vm0, %v366_v47  ;;  %617 = vmatpush.msk.msra.mxu3 %vm398_vm0, %v366_v47 }
  0xa0   : > { %419 = vmatpush.msra.mxu0 %v363_v50  ;;  %615 = vmatpush.msra.mxu2 %v363_v50 }
  0xa1   : > { %445 = vmatpush.msra.mxu1 %v364_v52  ;;  %618 = vmatpush.msra.mxu3 %v364_v52 }
  0xa2   : > { %420 = vmatpush.msra.mxu0 %v361_v54  ;;  %616 = vmatpush.msra.mxu2 %v361_v54  ;;  %v474_v13 = vpop.permute.xlu0 %473 }
  0xa3   : > { %446 = vmatpush.msra.mxu1 %v362_v55  ;;  %619 = vmatpush.msra.mxu3 %v362_v55  ;;  %v376_v59 = vpop.permute.xlu1 %375 }
  0xa4   : > { %603 = vmatmul.msk.f32.vlgmr.msra.gmra.mxu0 %vm388_vm1, %v367_v56  ;;  %604 = vmatmul.msk.f32.vlgmr.msra.gmra.mxu2 %vm388_vm1, %v368_v57 }
  0xa5   : > { %607 = vmatmul.msk.f32.vlgmr.msra.gmra.mxu1 %vm388_vm1, %v367_v56  ;;  %608 = vmatmul.msk.f32.vlgmr.msra.gmra.mxu3 %vm388_vm1, %v368_v57 }
  0xab   : > { %v386_v5 = vpop.permute.xlu1 %385 }
  0xac   : > { %605 = vmatmul.msk.f32.gmra.mxu2 %vm388_vm1, %v369_v58 }
  0xad   : > { %609 = vmatmul.msk.f32.gmra.mxu3 %vm388_vm1, %v369_v58 }
  0xb3   : > { %v479_v19 = vpop.permute.xlu1 %478 }
 0x121   : > { %v422_v62 = vpop.f32.mrf.mxu0 }
 0x122   : > { %v448_v0 = vpop.f32.mrf.mxu1  ;;  %v423_v3 = vadd.f32 %v422_v62, %v376_v59 }
 0x123   : > { %v449_v4 = vadd.f32 %v448_v0, %v376_v59 }
 0x127   : > { %v425_v61 = vpop.f32.mrf.mxu2 }
 0x128   : > { %v451_v63 = vpop.f32.mrf.mxu3  ;;  %v426_v1 = vadd.f32 %v425_v61, %v381_v60 }
 0x129   : > { %v452_v2 = vadd.f32 %v451_v63, %v381_v60 }
 0x12a   : > { %669 = vtanh.f32 %v426_v1 }
 0x12b   : > { %671 = vtanh.f32 %v452_v2 }
 0x12c   : > { %673 = vtanh.f32 %v423_v3 }
 0x12d   : > { %675 = vtanh.f32 %v449_v4 }
 0x12f   : > { %v428_v6 = vpop.f32.mrf.mxu2 }
 0x130   : > { %v429_v7 = vadd.f32 %v428_v6, %v386_v5  ;;  %v454_v8 = vpop.f32.mrf.mxu3  ;;  %v670_v10 = vpop.eup %669 }
 0x131   : > { %v455_v9 = vadd.f32 %v454_v8, %v386_v5  ;;  %v672_v11 = vpop.eup %671  ;;  %v483_v15 = vmul.f32 %v670_v10, %v474_v13 }
 0x132   : > { %677 = vtanh.f32 %v429_v7  ;;  %v674_v12 = vpop.eup %673  ;;  %v484_v17 = vmul.f32 %v672_v11, %v474_v13 }
 0x133   : > { %679 = vtanh.f32 %v455_v9  ;;  %v676_v14 = vpop.eup %675  ;;  %v481_v20 = vmul.f32 %v674_v12, %v469_v16 }
 0x134   : > { %v482_v22 = vmul.f32 %v676_v14, %v469_v16 }
 0x135   : > { %v487_v24 = vadd.f32 %v483_v15, %v481_v20 }
 0x136   : > { %v496_v26 = vadd.f32 %v484_v17, %v482_v22 }
 0x138   : > { %v678_v18 = vpop.eup %677 }
 0x139   : > { %v680_v21 = vpop.eup %679  ;;  %v485_v23 = vmul.f32 %v678_v18, %v479_v19 }
 0x13a   : > { %v486_v25 = vmul.f32 %v680_v21, %v479_v19 }
 0x13b   : > { %v488_v27 = vsel %vm398_vm0, %v485_v23, 0.0 }
 0x13c   : > { %v489_v28 = vadd.f32 %v488_v27, %v487_v24  ;;  %v497_v29 = vsel %vm398_vm0, %v486_v25, 0.0 }
 0x13d   : > { %v498_v30 = vadd.f32 %v497_v29, %v496_v26 }
 0x13e   : > { %v490_v31 = vrot.slane %v489_v28, 4 }
 0x13f   : > { %v499_v32 = vrot.slane %v498_v30, 4 }
 0x140   : > { %v491_v33 = vadd.f32 %v490_v31, %v489_v28 }
 0x141   : > { %v500_v34 = vadd.f32 %v499_v32, %v498_v30 }
 0x142   : > { %v492_v35 = vrot.slane %v491_v33, 2 }
 0x143   : > { %v501_v36 = vrot.slane %v500_v34, 2 }
 0x144   : > { %v493_v37 = vadd.f32 %v492_v35, %v491_v33 }
 0x145   : > { %v502_v38 = vadd.f32 %v501_v36, %v500_v34 }
 0x146   : > { %v494_v39 = vrot.slane %v493_v37, 1 }
 0x147   : > { %v503_v40 = vrot.slane %v502_v38, 1 }
 0x148   : > { %v495_v42 = vadd.f32 %v494_v39, %v493_v37 }
 0x149   : > { %v504_v43 = vadd.f32 %v503_v40, %v502_v38 }
 0x14a   : > { %v507_v46 = vadd.f32 %v506_v41, %v495_v42 }
 0x14b   : > { %v508_v45 = vadd.f32 %v506_v41, %v504_v43 }
 0x14d   : > { %v511_v47 = vrot.slane %v508_v45, 7 }
 0x14f   : > { %v513_v48 = vsel %vm512_vm2, %v507_v46, %v511_v47 }
 0x150   : > { %519 = vst.msk [vmem:[%s273_s30] sm:$0x3] %vm517_vm3, %v513_v48 }
 0x151   : > { %708 = shalt.err (!%p705_p3)
}
 0x152   : > { %620 = dma.vmem_to_hbm [thread:$0]  (%p827_p5), %s534_s9, 32, %s536_s10, %s521_s6  }
 0x153 PF: > { %p626_p4 = scmp.ge.s32.totalorder %s743_s29, 2  ;;  %s547_s20 = sand.u32 1, %s731_s26  }
 0x154   : > { %s548_s21 = scalar_lea.sflag [#allocation4], %s547_s20 }
 0x155   : > { %p623_p7 = pnand %p626_p4, %p831_p6 }
 0x157   : > { %p624_p8 = pneg %p623_p7 }
 0x159   : > { %726 = dma.done.wait (%p624_p8), %s548_s21, 32  }
 0x15a   : > { %728 = vsyncadd (%p624_p8), %s548_s21, 4294967264  ;;  %p18_p9 = scmp.ge.s32.totalorder %s813_s8, 4   ;;  %s939_s26 = smov %s735_s27 }
 0x15b   : > { %s940_s27 = smov %s739_s28  ;;  %s941_s28 = smov %s825_s11 }
 0x15c   : > { %s942_s29 = smov %s813_s8  ;;  %20 = sbr.rel (!%p18_p9) target bundleno = 5 (0x5), region = 83 }
 0x161   :  { %554 = vsyncpa [#allocation4], 1 }
 0x162   :  { %556 = vsyncpa [#allocation4 + $0x1], 1 }

// kernel: tpu_custom_call.1
= control target key start
LH: loop header
LB: loop body
LE: loop exit
PB: predicated region body
PF: predicated region fallthrough
CT: control target
= control target key end

     0   :  { %s929_s0 = inlined_call_operand.vmem [shape: f32[2,512], index: 0, kind: input, shape index: {}]   ;;  %s930_s1 = inlined_call_operand.vmem [shape: f32[20,2], index: 1, kind: input, shape index: {}]   ;;  %s931_s2 = inlined_call_operand.vmem [shape: f32[20,1], index: 2, kind: input, shape index: {}]   ;;  %s932_s3 = inlined_call_operand.vmem [shape: f32[1,20,20], index: 3, kind: input, shape index: {}]   ;;  %s933_s4 = inlined_call_operand.vmem [shape: f32[1,20,1], index: 4, kind: input, shape index: {}]   ;;  %s934_s5 = inlined_call_operand.vmem [shape: f32[20,1], index: 5, kind: input, shape index: {}]   ;;  %s935_s6 = inlined_call_operand.<no memory space> [shape: f32[1,1], index: 6, kind: input, shape index: {}]   ;;  %s936_s7 = inlined_call_operand.hbm [shape: f32[1,512], index: 7, kind: output, shape index: {}]  }
   0x1   :  { %12 = sst [smem:[#allocation2]] %s935_s6 }
   0x2   :  { %13 = vsyncpa [#allocation4], 0 }
   0x3   :  { %15 = vsyncpa [#allocation4 + $0x1], 0  ;;  %s790_s26 = smov 0   ;;  %s792_s27 = smov 0  }
   0x4   :  { %s794_s28 = smov 0   ;;  %s796_s29 = smov 0  }
   0x5 LB: > { %s594_s6 = sadd.s32 4294967295, %s743_s29   ;;  %s595_s30 = sadd.s32 4294967294, %s743_s29   ;;  %s743_s29 = sphi %s796_s29, %s942_s29   ;;  %s739_s28 = sphi %s794_s28, %s941_s28   ;;  %s735_s27 = sphi %s792_s27, %s940_s27   ;;  %s731_s26 = sphi %s790_s26, %s939_s26  }
   0x6   : > { %s813_s8 = sadd.s32 1, %s743_s29   ;;  %s180_s9 = sadd.s32 1, %s739_s28 }
   0x7   : > { %s177_s10 = ssub.s32 %s743_s29, %s813_s8  ;;  %p190_p0 = scmp.ne.s32.totalorder %s739_s28, %s735_s27 }
   0x8   : > { %p178_p1 = scmp.eq.s32.totalorder %s177_s10, 0  ;;  %p191_p2 = scmp.eq.s32.totalorder %s594_s6, 1 }
   0x9   : > { %p196_p3 = scmp.ne.s32.totalorder %s735_s27, %s731_s26  ;;  %p197_p4 = scmp.eq.s32.totalorder %s595_s30, 1 }
   0xa   : > { %s825_s11 = scalar_select %p178_p1, %s739_s28, %s180_s9  }
   0xb   : > { %p827_p5 = por %p191_p2, %p190_p0  ;;  %p831_p6 = por %p197_p4, %p196_p3 }
   0xc   : > { %p598_p7 = scmp.ge.s32.totalorder %s743_s29, 1  ;;  %p242_p8 = scmp.lt.s32.totalorder %s743_s29, 3 }
   0xe   : > { %p243_p9 = pnand %p598_p7, %p242_p8 }
   0xf   : > { %s875_s23 = sshll.u32 (!%p243_p9), %s594_s6, 1  ;;  %s505_s19 = sld [smem:[#allocation2]] (!%p243_p9) }
  0x10   : > { %246 = sbr.rel (%p243_p9) target bundleno = 339 (0x153), region = 48  ;;  %p275_p10 = scmp.lt.s32.totalorder (!%p243_p9), %s875_s23, 3 }
  0x11   : > { %s271_s20 = sand.u32 (!%p243_p9), 1, %s735_s27   ;;  %s701_s17 = scalar_lea.hbm (!%p243_p9), %s936_s7, 4 }
  0x12   : > { %s599_s21 = sshll.u32 (!%p243_p9), %s271_s20, 1  ;;  %s521_s6 = scalar_lea.sflag (!%p243_p9), [#allocation4], %s271_s20 }
  0x13   : > { %s273_s30 = scalar_lea.vmem (!%p243_p9), [#allocation3], %s599_s21 }
  0x14   : > { %s533_s9 = sshll.u32 (!%p243_p9), %s273_s30, 4  ;;  %s534_s9 = int_to_ptr.vmem [resolvable:$true] %s533_s9 }
  0x15   : > { %v284_v0 = vld [vmem:[%s930_s1 + $0x10] sm:$0xf]  ;;  %v283_v1 = vld [vmem:[%s930_s1 + $0x8] sm:$0xff]  ;;  %v745_v2 = vmov 1   ;;  %v746_v3 = vmov 0   ;;  %v282_v4 = vld [vmem:[%s930_s1] sm:$0xff] }
  0x16   : > { %661 = vset.pattern.permute.xlu0 %v745_v2  ;;  %663 = vset.pattern.permute.xlu1 %v746_v3  ;;  %v343_v5 = vld [vmem:[%s931_s2] sm:$0xff]  ;;  %v345_v6 = vld [vmem:[%s931_s2 + $0x10] sm:$0xf]  ;;  %v344_v7 = vld [vmem:[%s931_s2 + $0x8] sm:$0xff]  ;;  %s276_s24 = scalar_select %p275_p10, %s875_s23, 3  ;;  %vm398_vm0 = vcmask 1043456  }
  0x17   : > { %322 = vperm.xlu0 %661, %v284_v0   ;;  %292 = vperm.xlu1 %663, %v283_v1   ;;  %v464_v8 = vld [vmem:[%s934_s5 + $0x8] sm:$0xff]  ;;  %v370_v9 = vld [vmem:[%s933_s4] sm:$0xff]  ;;  %v372_v11 = vld [vmem:[%s933_s4 + $0x10] sm:$0xf]  ;;  %vm388_vm1 = vcmask 162816   ;;  %vm512_vm2 = vcmask 1040384  }
  0x18   : > { %665 = vset.pattern.permute.xlu2 %v746_v3  ;;  %v371_v10 = vld [vmem:[%s933_s4 + $0x8] sm:$0xff]  ;;  %v463_v12 = vld [vmem:[%s934_s5] sm:$0xff]  ;;  %v465_v13 = vld [vmem:[%s934_s5 + $0x10] sm:$0xf]  ;;  %s601_s25 = sshll.u32 %s276_s24, 1 }
  0x19   : > { %287 = vperm.xlu2 %665, %v282_v4   ;;  %s278_s10 = scalar_lea.vmem %s929_s0, %s601_s25  ;;  %v367_v56 = vld [vmem:[%s932_s3] sm:$0xff]  ;;  %v368_v57 = vld [vmem:[%s932_s3 + $0x8] sm:$0xff]  ;;  %v369_v58 = vld [vmem:[%s932_s3 + $0x10] sm:$0xf]  ;;  %s531_s25 = scalar_lea.hbm %s936_s7, %s875_s23 }
  0x1a   : > { %v281_v17 = vld [vmem:[%s278_s10] sm:$0xf]  ;;  %s535_s10 = sshll.u32 %s531_s25, 4  ;;  %s536_s10 = int_to_ptr.hbm [resolvable:$true] %s535_s10 }
  0x1b   : > { %v301_v18 = vperm.slane %v281_v17, 0  ;;  %v302_v19 = vperm.slane %v281_v17, 2  ;;  %v325_v20 = vperm.slane %v281_v17, 1  ;;  %v326_v21 = vperm.slane %v281_v17, 3  ;;  %s695_s14 = sshra.s32 %s536_s10, 4  ;;  %s696_s14 = int_to_ptr.hbm [resolvable:$true] %s695_s14 }
  0x1c   : > { %s697_s23 = scalar_lea.hbm %s696_s14, 2  ;;  %p702_p0 = scmp.lt.s32.totalorder %s696_s14, %s936_s7 }
  0x1d   : > { %v305_v25 = vperm.slane %v301_v18, 0  ;;  %v306_v26 = vperm.slane %v302_v19, 0  ;;  %v329_v27 = vperm.slane %v325_v20, 1  ;;  %v330_v28 = vperm.slane %v326_v21, 1  ;;  %p698_p11 = scmp.ne.s32.totalorder %s696_s14, %s697_s23  ;;  %p703_p1 = scmp.lt.s32.totalorder %s701_s17, %s697_s23 }
  0x1f   : > { %662 = vset.pattern.permute.xlu0 %v746_v3  ;;  %664 = vset.pattern.permute.xlu1 %v745_v2  ;;  %p699_p12 = pnand %p698_p11, %p827_p5  ;;  %p704_p2 = por %p703_p1, %p702_p0 }
  0x20   : > { %297 = vperm.xlu0 %662, %v284_v0   ;;  %318 = vperm.xlu1 %664, %v283_v1  }
  0x21   : > { %666 = vset.pattern.permute.xlu2 %v745_v2  ;;  %p700_p13 = pneg %p699_p12 }
  0x22   : > { %314 = vperm.xlu2 %666, %v282_v4  }
  0x23   : > { %p705_p3 = pnand %p704_p2, %p700_p13 }
  0x28   : > { %348 = vperm.xlu0 %662, %v343_v5   ;;  %667 = vset.pattern.permute.xlu1 %v746_v3 }
  0x29   : > { %358 = vperm.xlu1 %667, %v345_v6  }
  0x2a   : > { %668 = vset.pattern.permute.xlu2 %v746_v3 }
  0x2b   : > { %353 = vperm.xlu2 %668, %v344_v7  }
  0x30   : > { %473 = vperm.xlu0 %662, %v464_v8  }
  0x31   : > { %375 = vperm.xlu1 %667, %v370_v9  }
  0x33   : > { %380 = vperm.xlu2 %668, %v371_v10  }
  0x39   : > { %385 = vperm.xlu1 %667, %v372_v11  }
  0x3b   : > { %468 = vperm.xlu2 %668, %v463_v12  }
  0x41   : > { %478 = vperm.xlu1 %667, %v465_v13  }
  0x73   : > { %v288_v14 = vpop.permute.xlu2 %287 }
  0x74   : > { %v307_v36 = vmul.f32 %v305_v25, %v288_v14  ;;  %v308_v42 = vmul.f32 %v306_v26, %v288_v14 }
  0x7c   : > { %v315_v23 = vpop.permute.xlu2 %314 }
  0x7d   : > { %v331_v38 = vmul.f32 %v329_v27, %v315_v23  ;;  %v332_v43 = vmul.f32 %v330_v28, %v315_v23 }
  0x7f   : > { %v337_v51 = vadd.f32 %v331_v38, %v307_v36  ;;  %v338_v53 = vadd.f32 %v332_v43, %v308_v42 }
  0x85   : > { %v354_v48 = vpop.permute.xlu2 %353 }
  0x89   : > { %v293_v15 = vpop.permute.xlu1 %292  ;;  %v323_v16 = vpop.permute.xlu0 %322 }
  0x8a   : > { %v309_v33 = vmul.f32 %v305_v25, %v293_v15  ;;  %v335_v34 = vmul.f32 %v329_v27, %v323_v16  ;;  %v336_v35 = vmul.f32 %v330_v28, %v323_v16  ;;  %v310_v37 = vmul.f32 %v306_v26, %v293_v15 }
  0x8d   : > { %v381_v60 = vpop.permute.xlu2 %380 }
  0x92   : > { %v319_v22 = vpop.permute.xlu1 %318  ;;  %v298_v24 = vpop.permute.xlu0 %297 }
  0x93   : > { %v311_v29 = vmul.f32 %v305_v25, %v298_v24  ;;  %v312_v30 = vmul.f32 %v306_v26, %v298_v24  ;;  %v333_v31 = vmul.f32 %v329_v27, %v319_v22  ;;  %v334_v32 = vmul.f32 %v330_v28, %v319_v22 }
  0x95   : > { %v341_v39 = vadd.f32 %v335_v34, %v311_v29  ;;  %v342_v40 = vadd.f32 %v336_v35, %v312_v30  ;;  %v339_v41 = vadd.f32 %v333_v31, %v309_v33  ;;  %v340_v45 = vadd.f32 %v334_v32, %v310_v37  ;;  %v469_v16 = vpop.permute.xlu2 %468 }
  0x97   : > { %v363_v50 = vadd.f32 %v354_v48, %v339_v41  ;;  %v364_v52 = vadd.f32 %v354_v48, %v340_v45  ;;  %v506_v41 = vstv %s505_s19 }
  0x9a   : > { %v349_v49 = vpop.permute.xlu0 %348 }
  0x9b   : > { %v359_v44 = vpop.permute.xlu1 %358  ;;  %v361_v54 = vadd.f32 %v349_v49, %v337_v51  ;;  %v362_v55 = vadd.f32 %v349_v49, %v338_v53 }
  0x9c   : > { %v365_v46 = vadd.f32 %v359_v44, %v341_v39  ;;  %v366_v47 = vadd.f32 %v359_v44, %v342_v40  ;;  %v515_v44 = vlaneseq }
  0x9e   : > { %602 = vmatpush.msk.msra.mxu0 %vm398_vm0, %v365_v46  ;;  %614 = vmatpush.msk.msra.mxu2 %vm398_vm0, %v365_v46  ;;  %vm517_vm3 = vcmp.lt.s32.totalorder %v515_v44, 256 }
  0x9f   : > { %606 = vmatpush.msk.msra.mxu1 %vm398_vm0, %v366_v47  ;;  %617 = vmatpush.msk.msra.mxu3 %vm398_vm0, %v366_v47 }
  0xa0   : > { %419 = vmatpush.msra.mxu0 %v363_v50  ;;  %615 = vmatpush.msra.mxu2 %v363_v50 }
  0xa1   : > { %445 = vmatpush.msra.mxu1 %v364_v52  ;;  %618 = vmatpush.msra.mxu3 %v364_v52 }
  0xa2   : > { %420 = vmatpush.msra.mxu0 %v361_v54  ;;  %616 = vmatpush.msra.mxu2 %v361_v54  ;;  %v474_v13 = vpop.permute.xlu0 %473 }
  0xa3   : > { %446 = vmatpush.msra.mxu1 %v362_v55  ;;  %619 = vmatpush.msra.mxu3 %v362_v55  ;;  %v376_v59 = vpop.permute.xlu1 %375 }
  0xa4   : > { %603 = vmatmul.msk.f32.vlgmr.msra.gmra.mxu0 %vm388_vm1, %v367_v56  ;;  %604 = vmatmul.msk.f32.vlgmr.msra.gmra.mxu2 %vm388_vm1, %v368_v57 }
  0xa5   : > { %607 = vmatmul.msk.f32.vlgmr.msra.gmra.mxu1 %vm388_vm1, %v367_v56  ;;  %608 = vmatmul.msk.f32.vlgmr.msra.gmra.mxu3 %vm388_vm1, %v368_v57 }
  0xab   : > { %v386_v5 = vpop.permute.xlu1 %385 }
  0xac   : > { %605 = vmatmul.msk.f32.gmra.mxu2 %vm388_vm1, %v369_v58 }
  0xad   : > { %609 = vmatmul.msk.f32.gmra.mxu3 %vm388_vm1, %v369_v58 }
  0xb3   : > { %v479_v19 = vpop.permute.xlu1 %478 }
 0x121   : > { %v422_v62 = vpop.f32.mrf.mxu0 }
 0x122   : > { %v448_v0 = vpop.f32.mrf.mxu1  ;;  %v423_v3 = vadd.f32 %v422_v62, %v376_v59 }
 0x123   : > { %v449_v4 = vadd.f32 %v448_v0, %v376_v59 }
 0x127   : > { %v425_v61 = vpop.f32.mrf.mxu2 }
 0x128   : > { %v451_v63 = vpop.f32.mrf.mxu3  ;;  %v426_v1 = vadd.f32 %v425_v61, %v381_v60 }
 0x129   : > { %v452_v2 = vadd.f32 %v451_v63, %v381_v60 }
 0x12a   : > { %669 = vtanh.f32 %v426_v1 }
 0x12b   : > { %671 = vtanh.f32 %v452_v2 }
 0x12c   : > { %673 = vtanh.f32 %v423_v3 }
 0x12d   : > { %675 = vtanh.f32 %v449_v4 }
 0x12f   : > { %v428_v6 = vpop.f32.mrf.mxu2 }
 0x130   : > { %v429_v7 = vadd.f32 %v428_v6, %v386_v5  ;;  %v454_v8 = vpop.f32.mrf.mxu3  ;;  %v670_v10 = vpop.eup %669 }
 0x131   : > { %v455_v9 = vadd.f32 %v454_v8, %v386_v5  ;;  %v672_v11 = vpop.eup %671  ;;  %v483_v15 = vmul.f32 %v670_v10, %v474_v13 }
 0x132   : > { %677 = vtanh.f32 %v429_v7  ;;  %v674_v12 = vpop.eup %673  ;;  %v484_v17 = vmul.f32 %v672_v11, %v474_v13 }
 0x133   : > { %679 = vtanh.f32 %v455_v9  ;;  %v676_v14 = vpop.eup %675  ;;  %v481_v20 = vmul.f32 %v674_v12, %v469_v16 }
 0x134   : > { %v482_v22 = vmul.f32 %v676_v14, %v469_v16 }
 0x135   : > { %v487_v24 = vadd.f32 %v483_v15, %v481_v20 }
 0x136   : > { %v496_v26 = vadd.f32 %v484_v17, %v482_v22 }
 0x138   : > { %v678_v18 = vpop.eup %677 }
 0x139   : > { %v680_v21 = vpop.eup %679  ;;  %v485_v23 = vmul.f32 %v678_v18, %v479_v19 }
 0x13a   : > { %v486_v25 = vmul.f32 %v680_v21, %v479_v19 }
 0x13b   : > { %v488_v27 = vsel %vm398_vm0, %v485_v23, 0.0 }
 0x13c   : > { %v489_v28 = vadd.f32 %v488_v27, %v487_v24  ;;  %v497_v29 = vsel %vm398_vm0, %v486_v25, 0.0 }
 0x13d   : > { %v498_v30 = vadd.f32 %v497_v29, %v496_v26 }
 0x13e   : > { %v490_v31 = vrot.slane %v489_v28, 4 }
 0x13f   : > { %v499_v32 = vrot.slane %v498_v30, 4 }
 0x140   : > { %v491_v33 = vadd.f32 %v490_v31, %v489_v28 }
 0x141   : > { %v500_v34 = vadd.f32 %v499_v32, %v498_v30 }
 0x142   : > { %v492_v35 = vrot.slane %v491_v33, 2 }
 0x143   : > { %v501_v36 = vrot.slane %v500_v34, 2 }
 0x144   : > { %v493_v37 = vadd.f32 %v492_v35, %v491_v33 }
 0x145   : > { %v502_v38 = vadd.f32 %v501_v36, %v500_v34 }
 0x146   : > { %v494_v39 = vrot.slane %v493_v37, 1 }
 0x147   : > { %v503_v40 = vrot.slane %v502_v38, 1 }
 0x148   : > { %v495_v42 = vadd.f32 %v494_v39, %v493_v37 }
 0x149   : > { %v504_v43 = vadd.f32 %v503_v40, %v502_v38 }
 0x14a   : > { %v507_v46 = vadd.f32 %v506_v41, %v495_v42 }
 0x14b   : > { %v508_v45 = vadd.f32 %v506_v41, %v504_v43 }
 0x14d   : > { %v511_v47 = vrot.slane %v508_v45, 7 }
 0x14f   : > { %v513_v48 = vsel %vm512_vm2, %v507_v46, %v511_v47 }
 0x150   : > { %519 = vst.msk [vmem:[%s273_s30] sm:$0x3] %vm517_vm3, %v513_v48 }
 0x151   : > { %708 = shalt.err (!%p705_p3)
}
 0x152   : > { %620 = dma.vmem_to_hbm [thread:$0]  (%p827_p5), %s534_s9, 32, %s536_s10, %s521_s6  }
 0x153 PF: > { %p626_p4 = scmp.ge.s32.totalorder %s743_s29, 2  ;;  %s547_s20 = sand.u32 1, %s731_s26  }
 0x154   : > { %s548_s21 = scalar_lea.sflag [#allocation4], %s547_s20 }
 0x155   : > { %p623_p7 = pnand %p626_p4, %p831_p6 }
 0x157   : > { %p624_p8 = pneg %p623_p7 }
 0x159   : > { %726 = dma.done.wait (%p624_p8), %s548_s21, 32  }
 0x15a   : > { %728 = vsyncadd (%p624_p8), %s548_s21, 4294967264  ;;  %p18_p9 = scmp.ge.s32.totalorder %s813_s8, 4   ;;  %s939_s26 = smov %s735_s27 }
 0x15b   : > { %s940_s27 = smov %s739_s28  ;;  %s941_s28 = smov %s825_s11 }
 0x15c   : > { %s942_s29 = smov %s813_s8  ;;  %20 = sbr.rel (!%p18_p9) target bundleno = 5 (0x5), region = 83 }
 0x161   :  { %554 = vsyncpa [#allocation4], 1 }
 0x162   :  { %556 = vsyncpa [#allocation4 + $0x1], 1 }

</bundles_post_ra>
